<compile_context>
chip_gen: v7x
topology: tpu7x:2x2x1
jax: 0.10.0
libtpu: 0.0.40
codegen_flags: <defaults>
</compile_context>

<pallas_src>
import math

import numpy as np
import jax
import jax.numpy as jnp
from jax import lax
from jax.experimental import pallas as pl
from jax.experimental.pallas import tpu as pltpu

# ----------------------------- config (small, consistent with module) --------
TIME_STEPS = 1000
TIME_EMB_THETA = 10000
TIME_EMB_DIM = 16
T_HIDDEN = 32          # time-MLP hidden width
C_IN = 1               # input_dim
CH = 8                 # hidden conv channels
B, H, W = 2, 16, 16
HW = H * W
NTAP = 9


def _make_tap_constants(h, w):
    """SAME-padding edge masks + lane-roll shifts for the 9 taps of a 3x3 conv."""
    p = np.arange(h * w)
    row, col = p // w, p % w
    masks, shifts = [], []
    for i in range(3):
        for j in range(3):
            dy, dx = i - 1, j - 1
            ok = ((row + dy >= 0) & (row + dy < h) &
                  (col + dx >= 0) & (col + dx < w))
            masks.append(ok.astype(np.float32))
            shifts.append((-(dy * w + dx)) % (h * w))
    return np.stack(masks), tuple(shifts)


_TAP_MASKS_NP, _TAP_SHIFTS = _make_tap_constants(H, W)
_CENTER_TAP = 4           # (dy, dx) == (0, 0): no roll, no mask needed


def _silu_k(x):
    # In-kernel SiLU: exp + approximate reciprocal both run on the EUP slot.
    return x * pl.reciprocal(1.0 + jnp.exp(-x), approx=True)


def _silu_ref(x):
    return x * (1.0 / (1.0 + jnp.exp(-x)))


# ----------------------------- fused Pallas kernel ----------------------------
def _ddpm_fused_kernel(
    # SMEM scalar
    b2_ref,
    # VMEM inputs
    ca_ref, cb_ref, temb_ref, tw1_ref, tb1_ref, tw2_ref,
    selb_ref, selc_ref, cbias_ref, m1_ref, m2_ref, masks_ref,
    x0_ref, noise_ref,
    # output
    loss_ref,
    # VMEM scratch: (9 * B * CH, H*W) tap stack, reused for both conv layers
    taps_ref,
):
    f32 = jnp.float32
    rows = m1_ref.shape[0]          # B * CH
    hw = x0_ref.shape[1]
    bsz = x0_ref.shape[0]

    # ---- q-sample: x_t = sqrt(ac)[b] * (2*x0 - 1) + sqrt(1-ac)[b] * noise
    x_t = ca_ref[...] * (2.0 * x0_ref[...] - 1.0) + cb_ref[...] * noise_ref[...]

    # ---- time MLP -> per-(b, co) bias column (B*CH, 1)
    ht = _silu_k(jnp.dot(temb_ref[...], tw1_ref[...],
                         preferred_element_type=f32) + tb1_ref[...])
    t_out = jnp.dot(ht, tw2_ref[...], preferred_element_type=f32)         # (B, CH)
    t_rows = jnp.dot(selb_ref[...], t_out, preferred_element_type=f32)    # (R, CH)
    bias_col = (jnp.sum(t_rows * selc_ref[...], axis=1, keepdims=True)
                + cbias_ref[...])                                          # (R, 1)

    # ---- expand x_t to the (B*CH, HW) row space (Cin == 1 -> rows repeat per co)
    xe = jnp.dot(selb_ref[...], x_t, preferred_element_type=f32)           # (R, HW)

    def write_taps(src):
        # 9 lane rolls (XLU) of the whole row stack + SAME zero-padding edge
        # masks, stored sublane-aligned & lane-dense into the shared scratch.
        for k, s in enumerate(_TAP_SHIFTS):
            t = src if s == 0 else pltpu.roll(src, shift=s, axis=1)
            if k != _CENTER_TAP:
                t = t * masks_ref[k:k + 1, :]
            taps_ref[k * rows:(k + 1) * rows, :] = t

    # ---- conv1 (3x3, 1 -> CH) + bias + SiLU: one MXU contraction
    write_taps(xe)
    hidden = _silu_k(jnp.dot(m1_ref[...], taps_ref[...],
                             preferred_element_type=f32) + bias_col)       # (R, HW)

    # ---- conv2 (3x3, CH -> 1) + bias: one MXU contraction (scratch reused)
    write_taps(hidden)
    out = (jnp.dot(m2_ref[...], taps_ref[...], preferred_element_type=f32)
           + b2_ref[0, 0])                                                 # (B, HW)

    # ---- fused MSE: per-batch mean over pixels, then mean over batch
    #      (equal per-batch sizes -> global mean)
    d = out - noise_ref[...]
    ssq = jnp.sum(jnp.sum(d * d, axis=1, keepdims=True), axis=0, keepdims=True)
    loss_ref[...] = ssq * (1.0 / float(bsz * hw))


def ddpm_fused_loss(params, ca, cb, temb, x0_flat, noise_flat):
    bsz, hw = x0_flat.shape
    ch = params["w1"].shape[0]
    rows = bsz * ch

    # ---- weight re-layout into MXU-friendly block-sparse matrices.
    #      (O(CH*9) elements of XLA glue; would be cached across steps in a
    #       real training loop.)
    w1, w2 = params["w1"], params["w2"]                      # (CH, 9) each
    eye_r = jnp.eye(rows, dtype=jnp.float32)
    w1_rows = jnp.tile(w1, (bsz, 1))                                       # (R, 9)
    # M1[r, k*R + r] = w1[co(r), k]
    m1 = (w1_rows[:, :, None] * eye_r[:, None, :]).reshape(rows, NTAP * rows)
    # M2[b, k*R + b*CH + ci] = w2[ci, k]
    m2 = (jnp.eye(bsz, dtype=jnp.float32)[:, None, :, None]
          * w2.T[None, :, None, :]).reshape(bsz, NTAP * rows)
    sel_b = jnp.repeat(jnp.eye(bsz, dtype=jnp.float32), ch, axis=0)        # (R, B)
    sel_c = jnp.tile(jnp.eye(ch, dtype=jnp.float32), (bsz, 1))             # (R, CH)
    cbias = jnp.tile((params["b1"] + params["t_b2"].reshape(-1))[:, None],
                     (bsz, 1))                                             # (R, 1)
    b2 = params["b2"].reshape(1, 1)
    masks = jnp.asarray(_TAP_MASKS_NP)                                     # (9, HW)

    vmem = lambda: pl.BlockSpec(memory_space=pltpu.MemorySpace.VMEM)
    smem = lambda: pl.BlockSpec(memory_space=pltpu.MemorySpace.SMEM)

    # Gridless single launch: the whole working set (~0.2 MiB) lives in VMEM.
    # TODO(synk): at larger B / resolution, add a B-tiled "parallel" grid
    # (v7x: 2 TensorCores, 64 MiB VMEM) and re-derive the scratch budget.
    out = pl.pallas_call(
        _ddpm_fused_kernel,
        out_shape=jax.ShapeDtypeStruct((1, 1), jnp.float32),
        in_specs=[smem()] + [vmem()] * 14,
        out_specs=vmem(),
        scratch_shapes=[pltpu.VMEM((NTAP * rows, hw), jnp.float32)],
    )(b2, ca.reshape(bsz, 1), cb.reshape(bsz, 1), temb,
      params["t_w1"], params["t_b1"], params["t_w2"],
      sel_b, sel_c, cbias, m1, m2, masks, x0_flat, noise_flat)
    return out[0, 0]


# ----------------------------- glue: buffers, params, embeddings --------------
def make_buffers(time_steps):
    betas = jnp.linspace(1e-4, 0.02, time_steps, dtype=jnp.float32)
    alphas = 1.0 - betas
    ac = jnp.cumprod(alphas)
    return {
        "betas": betas,
        "alphas": alphas,
        "alphas_cumprod": ac,
        "sqrt_alphas_cumprod": jnp.sqrt(ac),
        "sqrt_one_minus_alphas_cumprod": jnp.sqrt(1.0 - ac),
    }


def sinusoidal_time_emb(t, dim, theta):
    half = dim // 2
    freqs = jnp.exp(-math.log(theta) * jnp.arange(half, dtype=jnp.float32)
                    / (half - 1))
    args = t.astype(jnp.float32)[:, None] * freqs[None, :]
    return jnp.concatenate([jnp.sin(args), jnp.cos(args)], axis=-1)


def init_params(key):
    ks = jax.random.split(key, 4)
    w = lambda k, s: jax.random.normal(k, s, jnp.float32) * 0.1
    return {
        "t_w1": w(ks[0], (TIME_EMB_DIM, T_HIDDEN)),
        "t_b1": jnp.zeros((1, T_HIDDEN), jnp.float32),
        "t_w2": w(ks[1], (T_HIDDEN, CH)),
        "t_b2": jnp.zeros((1, CH), jnp.float32),
        "w1": w(ks[2], (CH, 9)),        # conv1 taps: (Cout=CH, Cin=1 * 3*3)
        "b1": jnp.zeros((CH,), jnp.float32),
        "w2": w(ks[3], (CH, 9)),        # conv2 taps: (Cin=CH, 3*3), Cout=1
        "b2": jnp.zeros((1,), jnp.float32),
    }


# ----------------------------- forward (algorithm1) ---------------------------
def ddpm_forward(params, buffers, x_0, key):
    """DDPM.forward == algorithm1: q-sample noising, noise prediction, MSE loss."""
    bz = x_0.shape[0]
    k_t, k_noise = jax.random.split(key)
    t = jax.random.randint(k_t, (bz,), 0, TIME_STEPS)
    noise = jax.random.normal(k_noise, x_0.shape, jnp.float32)

    ca = buffers["sqrt_alphas_cumprod"][t]                         # (B,)
    cb = buffers["sqrt_one_minus_alphas_cumprod"][t]               # (B,)
    temb = sinusoidal_time_emb(t, TIME_EMB_DIM, TIME_EMB_THETA)    # (B, 16)

    x0_flat = x_0.reshape(bz, HW)            # C_IN == 1
    noise_flat = noise.reshape(bz, HW)
    return ddpm_fused_loss(params, ca, cb, temb, x0_flat, noise_flat)


# Pure-JAX reference (same math, lax.conv + exact SiLU) for verification.
def ddpm_forward_ref(params, buffers, x_0, key):
    bz = x_0.shape[0]
    k_t, k_noise = jax.random.split(key)
    t = jax.random.randint(k_t, (bz,), 0, TIME_STEPS)
    noise = jax.random.normal(k_noise, x_0.shape, jnp.float32)

    ca = buffers["sqrt_alphas_cumprod"][t].reshape(bz, 1, 1, 1)
    cb = buffers["sqrt_one_minus_alphas_cumprod"][t].reshape(bz, 1, 1, 1)
    x_t = ca * (2.0 * x_0 - 1.0) + cb * noise                      # NCHW

    temb = sinusoidal_time_emb(t, TIME_EMB_DIM, TIME_EMB_THETA)
    ht = _silu_ref(temb @ params["t_w1"] + params["t_b1"])
    tbias = ht @ params["t_w2"] + params["t_b2"]                   # (B, CH)

    w1 = params["w1"].reshape(CH, 1, 3, 3)
    h1 = lax.conv_general_dilated(x_t, w1, (1, 1), "SAME",
                                  dimension_numbers=("NCHW", "OIHW", "NCHW"))
    h1 = _silu_ref(h1 + params["b1"].reshape(1, CH, 1, 1)
                   + tbias[:, :, None, None])

    w2 = params["w2"].reshape(1, CH, 3, 3)
    out = lax.conv_general_dilated(h1, w2, (1, 1), "SAME",
                                   dimension_numbers=("NCHW", "OIHW", "NCHW"))
    out = out + params["b2"].reshape(1, 1, 1, 1)

    err = (out - noise) ** 2
    return jnp.mean(err.reshape(bz, -1), axis=1).mean()


# ----------------------------- main --------------------------------------------
if __name__ == "__main__":
    key = jax.random.PRNGKey(0)
    k_x, k_p, k_fwd = jax.random.split(key, 3)

    x0 = jax.random.uniform(k_x, (B, C_IN, H, W), jnp.float32)   # images in [0, 1]
    params = init_params(k_p)
    buffers = make_buffers(TIME_STEPS)

    loss = jax.jit(ddpm_forward)(params, buffers, x0, k_fwd)
    loss = jax.block_until_ready(loss)

    ref = ddpm_forward_ref(params, buffers, x0, k_fwd)
    assert jnp.isfinite(loss), "loss is not finite"
    # Only deviation from the exact reference is the approximate EUP reciprocal
    # inside the in-kernel SiLU -> tolerance ~1e-3 instead of 1e-5.
    assert jnp.allclose(loss, ref, rtol=2e-3, atol=2e-4), (loss, ref)
    print("KERNEL_OK")
</pallas_src>

<mosaic_0001>
module attributes {stable_mosaic.version = 11 : i64} {
  func.func @_ddpm_fused_kernel(%arg0: memref<1x1xf32, #tpu.memory_space<smem>>, %arg1: memref<2x1xf32, #tpu.memory_space<vmem>>, %arg2: memref<2x1xf32, #tpu.memory_space<vmem>>, %arg3: memref<2x16xf32, #tpu.memory_space<vmem>>, %arg4: memref<16x32xf32, #tpu.memory_space<vmem>>, %arg5: memref<1x32xf32, #tpu.memory_space<vmem>>, %arg6: memref<32x8xf32, #tpu.memory_space<vmem>>, %arg7: memref<16x2xf32, #tpu.memory_space<vmem>>, %arg8: memref<16x8xf32, #tpu.memory_space<vmem>>, %arg9: memref<16x1xf32, #tpu.memory_space<vmem>>, %arg10: memref<16x144xf32, #tpu.memory_space<vmem>>, %arg11: memref<2x144xf32, #tpu.memory_space<vmem>>, %arg12: memref<9x256xf32, #tpu.memory_space<vmem>>, %arg13: memref<2x256xf32, #tpu.memory_space<vmem>>, %arg14: memref<2x256xf32, #tpu.memory_space<vmem>>, %arg15: memref<1x1xf32, #tpu.memory_space<vmem>>, %arg16: memref<144x256xf32, #tpu.memory_space<vmem>>) attributes {dimension_semantics = [], scalar_prefetch = 0 : i64, scratch_operands = 1 : i64, tpu.core_type = #tpu.core_type<tc>} {
    %c0 = arith.constant 0 : index
    %c0_0 = arith.constant 0 : index
    %0 = vector.load %arg1[%c0, %c0_0] : memref<2x1xf32, #tpu.memory_space<vmem>>, vector<2x1xf32>
    %c0_1 = arith.constant 0 : index
    %c0_2 = arith.constant 0 : index
    %1 = vector.load %arg13[%c0_1, %c0_2] : memref<2x256xf32, #tpu.memory_space<vmem>>, vector<2x256xf32>
    %cst = arith.constant 2.000000e+00 : f32
    %2 = vector.broadcast %cst : f32 to vector<2x256xf32>
    %3 = arith.mulf %2, %1 : vector<2x256xf32>
    %cst_3 = arith.constant 1.000000e+00 : f32
    %4 = vector.broadcast %cst_3 : f32 to vector<2x256xf32>
    %5 = arith.subf %3, %4 : vector<2x256xf32>
    %6 = vector.broadcast %0 : vector<2x1xf32> to vector<2x256xf32>
    %7 = arith.mulf %6, %5 : vector<2x256xf32>
    %c0_4 = arith.constant 0 : index
    %c0_5 = arith.constant 0 : index
    %8 = vector.load %arg2[%c0_4, %c0_5] : memref<2x1xf32, #tpu.memory_space<vmem>>, vector<2x1xf32>
    %c0_6 = arith.constant 0 : index
    %c0_7 = arith.constant 0 : index
    %9 = vector.load %arg14[%c0_6, %c0_7] : memref<2x256xf32, #tpu.memory_space<vmem>>, vector<2x256xf32>
    %10 = vector.broadcast %8 : vector<2x1xf32> to vector<2x256xf32>
    %11 = arith.mulf %10, %9 : vector<2x256xf32>
    %12 = arith.addf %7, %11 : vector<2x256xf32>
    %c0_8 = arith.constant 0 : index
    %c0_9 = arith.constant 0 : index
    %13 = vector.load %arg3[%c0_8, %c0_9] : memref<2x16xf32, #tpu.memory_space<vmem>>, vector<2x16xf32>
    %c0_10 = arith.constant 0 : index
    %c0_11 = arith.constant 0 : index
    %14 = vector.load %arg4[%c0_10, %c0_11] : memref<16x32xf32, #tpu.memory_space<vmem>>, vector<16x32xf32>
    %cst_12 = arith.constant dense<0.000000e+00> : vector<2x32xf32>
    %15 = tpu.matmul %13, %14, %cst_12 {dimension_numbers = #tpu.dot_dimension_numbers<[1], [0], [0], [1], [0, 0, 1, 1], [], []>} : vector<2x16xf32>, vector<16x32xf32>, vector<2x32xf32> -> vector<2x32xf32>
    %c0_13 = arith.constant 0 : index
    %c0_14 = arith.constant 0 : index
    %16 = vector.load %arg5[%c0_13, %c0_14] : memref<1x32xf32, #tpu.memory_space<vmem>>, vector<1x32xf32>
    %17 = vector.broadcast %16 : vector<1x32xf32> to vector<2x32xf32>
    %18 = arith.addf %15, %17 : vector<2x32xf32>
    %cst_15 = arith.constant 0.000000e+00 : f32
    %19 = vector.broadcast %cst_15 : f32 to vector<2x32xf32>
    %20 = arith.subf %19, %18 : vector<2x32xf32>
    %21 = math.exp %20 : vector<2x32xf32>
    %cst_16 = arith.constant 1.000000e+00 : f32
    %22 = vector.broadcast %cst_16 : f32 to vector<2x32xf32>
    %23 = arith.addf %22, %21 : vector<2x32xf32>
    %24 = tpu.reciprocal %23 {approx = true} : vector<2x32xf32> -> vector<2x32xf32>
    %25 = arith.mulf %18, %24 : vector<2x32xf32>
    %c0_17 = arith.constant 0 : index
    %c0_18 = arith.constant 0 : index
    %26 = vector.load %arg6[%c0_17, %c0_18] : memref<32x8xf32, #tpu.memory_space<vmem>>, vector<32x8xf32>
    %cst_19 = arith.constant dense<0.000000e+00> : vector<2x8xf32>
    %27 = tpu.matmul %25, %26, %cst_19 {dimension_numbers = #tpu.dot_dimension_numbers<[1], [0], [0], [1], [0, 0, 1, 1], [], []>} : vector<2x32xf32>, vector<32x8xf32>, vector<2x8xf32> -> vector<2x8xf32>
    %c0_20 = arith.constant 0 : index
    %c0_21 = arith.constant 0 : index
    %28 = vector.load %arg7[%c0_20, %c0_21] : memref<16x2xf32, #tpu.memory_space<vmem>>, vector<16x2xf32>
    %cst_22 = arith.constant dense<0.000000e+00> : vector<16x8xf32>
    %29 = tpu.matmul %28, %27, %cst_22 {dimension_numbers = #tpu.dot_dimension_numbers<[1], [0], [0], [1], [0, 0, 1, 1], [], []>} : vector<16x2xf32>, vector<2x8xf32>, vector<16x8xf32> -> vector<16x8xf32>
    %c0_23 = arith.constant 0 : index
    %c0_24 = arith.constant 0 : index
    %30 = vector.load %arg8[%c0_23, %c0_24] : memref<16x8xf32, #tpu.memory_space<vmem>>, vector<16x8xf32>
    %31 = arith.mulf %29, %30 : vector<16x8xf32>
    %cst_25 = arith.constant dense<0.000000e+00> : vector<16xf32>
    %32 = vector.multi_reduction <add>, %31, %cst_25 [1] : vector<16x8xf32> to vector<16xf32>
    %33 = vector.shape_cast %32 : vector<16xf32> to vector<16x1xf32>
    %c0_26 = arith.constant 0 : index
    %c0_27 = arith.constant 0 : index
    %34 = vector.load %arg9[%c0_26, %c0_27] : memref<16x1xf32, #tpu.memory_space<vmem>>, vector<16x1xf32>
    %35 = arith.addf %33, %34 : vector<16x1xf32>
    %c0_28 = arith.constant 0 : index
    %c0_29 = arith.constant 0 : index
    %36 = vector.load %arg7[%c0_28, %c0_29] : memref<16x2xf32, #tpu.memory_space<vmem>>, vector<16x2xf32>
    %cst_30 = arith.constant dense<0.000000e+00> : vector<16x256xf32>
    %37 = tpu.matmul %36, %12, %cst_30 {dimension_numbers = #tpu.dot_dimension_numbers<[1], [0], [0], [1], [0, 0, 1, 1], [], []>} : vector<16x2xf32>, vector<2x256xf32>, vector<16x256xf32> -> vector<16x256xf32>
    %c17_i32 = arith.constant 17 : i32
    %38 = tpu.dynamic_rotate %37 by %c17_i32 dim 1 : vector<16x256xf32>, i32 -> vector<16x256xf32>
    %c0_31 = arith.constant 0 : index
    %c0_32 = arith.constant 0 : index
    %39 = vector.load %arg12[%c0_31, %c0_32] : memref<9x256xf32, #tpu.memory_space<vmem>>, vector<1x256xf32>
    %40 = vector.broadcast %39 : vector<1x256xf32> to vector<16x256xf32>
    %41 = arith.mulf %38, %40 : vector<16x256xf32>
    %c0_33 = arith.constant 0 : index
    %c0_34 = arith.constant 0 : index
    %42 = vector.load %arg16[%c0_33, %c0_34] : memref<144x256xf32, #tpu.memory_space<vmem>>, vector<16x256xf32>
    tpu.vector_store %arg16[%c0_33, %c0_34], %41 {strides = array<i32>} : memref<144x256xf32, #tpu.memory_space<vmem>>, vector<16x256xf32>,
    %c16_i32 = arith.constant 16 : i32
    %43 = tpu.dynamic_rotate %37 by %c16_i32 dim 1 : vector<16x256xf32>, i32 -> vector<16x256xf32>
    %c1 = arith.constant 1 : index
    %c0_35 = arith.constant 0 : index
    %44 = vector.load %arg12[%c1, %c0_35] : memref<9x256xf32, #tpu.memory_space<vmem>>, vector<1x256xf32>
    %45 = vector.broadcast %44 : vector<1x256xf32> to vector<16x256xf32>
    %46 = arith.mulf %43, %45 : vector<16x256xf32>
    %c16 = arith.constant 16 : index
    %c0_36 = arith.constant 0 : index
    %47 = vector.load %arg16[%c16, %c0_36] : memref<144x256xf32, #tpu.memory_space<vmem>>, vector<16x256xf32>
    tpu.vector_store %arg16[%c16, %c0_36], %46 {strides = array<i32>} : memref<144x256xf32, #tpu.memory_space<vmem>>, vector<16x256xf32>,
    %c15_i32 = arith.constant 15 : i32
    %48 = tpu.dynamic_rotate %37 by %c15_i32 dim 1 : vector<16x256xf32>, i32 -> vector<16x256xf32>
    %c2 = arith.constant 2 : index
    %c0_37 = arith.constant 0 : index
    %49 = vector.load %arg12[%c2, %c0_37] : memref<9x256xf32, #tpu.memory_space<vmem>>, vector<1x256xf32>
    %50 = vector.broadcast %49 : vector<1x256xf32> to vector<16x256xf32>
    %51 = arith.mulf %48, %50 : vector<16x256xf32>
    %c32 = arith.constant 32 : index
    %c0_38 = arith.constant 0 : index
    %52 = vector.load %arg16[%c32, %c0_38] : memref<144x256xf32, #tpu.memory_space<vmem>>, vector<16x256xf32>
    tpu.vector_store %arg16[%c32, %c0_38], %51 {strides = array<i32>} : memref<144x256xf32, #tpu.memory_space<vmem>>, vector<16x256xf32>,
    %c1_i32 = arith.constant 1 : i32
    %53 = tpu.dynamic_rotate %37 by %c1_i32 dim 1 : vector<16x256xf32>, i32 -> vector<16x256xf32>
    %c3 = arith.constant 3 : index
    %c0_39 = arith.constant 0 : index
    %54 = vector.load %arg12[%c3, %c0_39] : memref<9x256xf32, #tpu.memory_space<vmem>>, vector<1x256xf32>
    %55 = vector.broadcast %54 : vector<1x256xf32> to vector<16x256xf32>
    %56 = arith.mulf %53, %55 : vector<16x256xf32>
    %c48 = arith.constant 48 : index
    %c0_40 = arith.constant 0 : index
    %57 = vector.load %arg16[%c48, %c0_40] : memref<144x256xf32, #tpu.memory_space<vmem>>, vector<16x256xf32>
    tpu.vector_store %arg16[%c48, %c0_40], %56 {strides = array<i32>} : memref<144x256xf32, #tpu.memory_space<vmem>>, vector<16x256xf32>,
    %c64 = arith.constant 64 : index
    %c0_41 = arith.constant 0 : index
    %58 = vector.load %arg16[%c64, %c0_41] : memref<144x256xf32, #tpu.memory_space<vmem>>, vector<16x256xf32>
    tpu.vector_store %arg16[%c64, %c0_41], %37 {strides = array<i32>} : memref<144x256xf32, #tpu.memory_space<vmem>>, vector<16x256xf32>,
    %c255_i32 = arith.constant 255 : i32
    %59 = tpu.dynamic_rotate %37 by %c255_i32 dim 1 : vector<16x256xf32>, i32 -> vector<16x256xf32>
    %c5 = arith.constant 5 : index
    %c0_42 = arith.constant 0 : index
    %60 = vector.load %arg12[%c5, %c0_42] : memref<9x256xf32, #tpu.memory_space<vmem>>, vector<1x256xf32>
    %61 = vector.broadcast %60 : vector<1x256xf32> to vector<16x256xf32>
    %62 = arith.mulf %59, %61 : vector<16x256xf32>
    %c80 = arith.constant 80 : index
    %c0_43 = arith.constant 0 : index
    %63 = vector.load %arg16[%c80, %c0_43] : memref<144x256xf32, #tpu.memory_space<vmem>>, vector<16x256xf32>
    tpu.vector_store %arg16[%c80, %c0_43], %62 {strides = array<i32>} : memref<144x256xf32, #tpu.memory_space<vmem>>, vector<16x256xf32>,
    %c241_i32 = arith.constant 241 : i32
    %64 = tpu.dynamic_rotate %37 by %c241_i32 dim 1 : vector<16x256xf32>, i32 -> vector<16x256xf32>
    %c6 = arith.constant 6 : index
    %c0_44 = arith.constant 0 : index
    %65 = vector.load %arg12[%c6, %c0_44] : memref<9x256xf32, #tpu.memory_space<vmem>>, vector<1x256xf32>
    %66 = vector.broadcast %65 : vector<1x256xf32> to vector<16x256xf32>
    %67 = arith.mulf %64, %66 : vector<16x256xf32>
    %c96 = arith.constant 96 : index
    %c0_45 = arith.constant 0 : index
    %68 = vector.load %arg16[%c96, %c0_45] : memref<144x256xf32, #tpu.memory_space<vmem>>, vector<16x256xf32>
    tpu.vector_store %arg16[%c96, %c0_45], %67 {strides = array<i32>} : memref<144x256xf32, #tpu.memory_space<vmem>>, vector<16x256xf32>,
    %c240_i32 = arith.constant 240 : i32
    %69 = tpu.dynamic_rotate %37 by %c240_i32 dim 1 : vector<16x256xf32>, i32 -> vector<16x256xf32>
    %c7 = arith.constant 7 : index
    %c0_46 = arith.constant 0 : index
    %70 = vector.load %arg12[%c7, %c0_46] : memref<9x256xf32, #tpu.memory_space<vmem>>, vector<1x256xf32>
    %71 = vector.broadcast %70 : vector<1x256xf32> to vector<16x256xf32>
    %72 = arith.mulf %69, %71 : vector<16x256xf32>
    %c112 = arith.constant 112 : index
    %c0_47 = arith.constant 0 : index
    %73 = vector.load %arg16[%c112, %c0_47] : memref<144x256xf32, #tpu.memory_space<vmem>>, vector<16x256xf32>
    tpu.vector_store %arg16[%c112, %c0_47], %72 {strides = array<i32>} : memref<144x256xf32, #tpu.memory_space<vmem>>, vector<16x256xf32>,
    %c239_i32 = arith.constant 239 : i32
    %74 = tpu.dynamic_rotate %37 by %c239_i32 dim 1 : vector<16x256xf32>, i32 -> vector<16x256xf32>
    %c8 = arith.constant 8 : index
    %c0_48 = arith.constant 0 : index
    %75 = vector.load %arg12[%c8, %c0_48] : memref<9x256xf32, #tpu.memory_space<vmem>>, vector<1x256xf32>
    %76 = vector.broadcast %75 : vector<1x256xf32> to vector<16x256xf32>
    %77 = arith.mulf %74, %76 : vector<16x256xf32>
    %c128 = arith.constant 128 : index
    %c0_49 = arith.constant 0 : index
    %78 = vector.load %arg16[%c128, %c0_49] : memref<144x256xf32, #tpu.memory_space<vmem>>, vector<16x256xf32>
    tpu.vector_store %arg16[%c128, %c0_49], %77 {strides = array<i32>} : memref<144x256xf32, #tpu.memory_space<vmem>>, vector<16x256xf32>,
    %c0_50 = arith.constant 0 : index
    %c0_51 = arith.constant 0 : index
    %79 = vector.load %arg10[%c0_50, %c0_51] : memref<16x144xf32, #tpu.memory_space<vmem>>, vector<16x144xf32>
    %c0_52 = arith.constant 0 : index
    %c0_53 = arith.constant 0 : index
    %80 = vector.load %arg16[%c0_52, %c0_53] : memref<144x256xf32, #tpu.memory_space<vmem>>, vector<144x256xf32>
    %cst_54 = arith.constant dense<0.000000e+00> : vector<16x256xf32>
    %81 = tpu.matmul %79, %80, %cst_54 {dimension_numbers = #tpu.dot_dimension_numbers<[1], [0], [0], [1], [0, 0, 1, 1], [], []>} : vector<16x144xf32>, vector<144x256xf32>, vector<16x256xf32> -> vector<16x256xf32>
    %82 = vector.broadcast %35 : vector<16x1xf32> to vector<16x256xf32>
    %83 = arith.addf %81, %82 : vector<16x256xf32>
    %cst_55 = arith.constant 0.000000e+00 : f32
    %84 = vector.broadcast %cst_55 : f32 to vector<16x256xf32>
    %85 = arith.subf %84, %83 : vector<16x256xf32>
    %86 = math.exp %85 : vector<16x256xf32>
    %cst_56 = arith.constant 1.000000e+00 : f32
    %87 = vector.broadcast %cst_56 : f32 to vector<16x256xf32>
    %88 = arith.addf %87, %86 : vector<16x256xf32>
    %89 = tpu.reciprocal %88 {approx = true} : vector<16x256xf32> -> vector<16x256xf32>
    %90 = arith.mulf %83, %89 : vector<16x256xf32>
    %c17_i32_57 = arith.constant 17 : i32
    %91 = tpu.dynamic_rotate %90 by %c17_i32_57 dim 1 : vector<16x256xf32>, i32 -> vector<16x256xf32>
    %c0_58 = arith.constant 0 : index
    %c0_59 = arith.constant 0 : index
    %92 = vector.load %arg12[%c0_58, %c0_59] : memref<9x256xf32, #tpu.memory_space<vmem>>, vector<1x256xf32>
    %93 = vector.broadcast %92 : vector<1x256xf32> to vector<16x256xf32>
    %94 = arith.mulf %91, %93 : vector<16x256xf32>
    %c0_60 = arith.constant 0 : index
    %c0_61 = arith.constant 0 : index
    %95 = vector.load %arg16[%c0_60, %c0_61] : memref<144x256xf32, #tpu.memory_space<vmem>>, vector<16x256xf32>
    tpu.vector_store %arg16[%c0_60, %c0_61], %94 {strides = array<i32>} : memref<144x256xf32, #tpu.memory_space<vmem>>, vector<16x256xf32>,
    %c16_i32_62 = arith.constant 16 : i32
    %96 = tpu.dynamic_rotate %90 by %c16_i32_62 dim 1 : vector<16x256xf32>, i32 -> vector<16x256xf32>
    %c1_63 = arith.constant 1 : index
    %c0_64 = arith.constant 0 : index
    %97 = vector.load %arg12[%c1_63, %c0_64] : memref<9x256xf32, #tpu.memory_space<vmem>>, vector<1x256xf32>
    %98 = vector.broadcast %97 : vector<1x256xf32> to vector<16x256xf32>
    %99 = arith.mulf %96, %98 : vector<16x256xf32>
    %c16_65 = arith.constant 16 : index
    %c0_66 = arith.constant 0 : index
    %100 = vector.load %arg16[%c16_65, %c0_66] : memref<144x256xf32, #tpu.memory_space<vmem>>, vector<16x256xf32>
    tpu.vector_store %arg16[%c16_65, %c0_66], %99 {strides = array<i32>} : memref<144x256xf32, #tpu.memory_space<vmem>>, vector<16x256xf32>,
    %c15_i32_67 = arith.constant 15 : i32
    %101 = tpu.dynamic_rotate %90 by %c15_i32_67 dim 1 : vector<16x256xf32>, i32 -> vector<16x256xf32>
    %c2_68 = arith.constant 2 : index
    %c0_69 = arith.constant 0 : index
    %102 = vector.load %arg12[%c2_68, %c0_69] : memref<9x256xf32, #tpu.memory_space<vmem>>, vector<1x256xf32>
    %103 = vector.broadcast %102 : vector<1x256xf32> to vector<16x256xf32>
    %104 = arith.mulf %101, %103 : vector<16x256xf32>
    %c32_70 = arith.constant 32 : index
    %c0_71 = arith.constant 0 : index
    %105 = vector.load %arg16[%c32_70, %c0_71] : memref<144x256xf32, #tpu.memory_space<vmem>>, vector<16x256xf32>
    tpu.vector_store %arg16[%c32_70, %c0_71], %104 {strides = array<i32>} : memref<144x256xf32, #tpu.memory_space<vmem>>, vector<16x256xf32>,
    %c1_i32_72 = arith.constant 1 : i32
    %106 = tpu.dynamic_rotate %90 by %c1_i32_72 dim 1 : vector<16x256xf32>, i32 -> vector<16x256xf32>
    %c3_73 = arith.constant 3 : index
    %c0_74 = arith.constant 0 : index
    %107 = vector.load %arg12[%c3_73, %c0_74] : memref<9x256xf32, #tpu.memory_space<vmem>>, vector<1x256xf32>
    %108 = vector.broadcast %107 : vector<1x256xf32> to vector<16x256xf32>
    %109 = arith.mulf %106, %108 : vector<16x256xf32>
    %c48_75 = arith.constant 48 : index
    %c0_76 = arith.constant 0 : index
    %110 = vector.load %arg16[%c48_75, %c0_76] : memref<144x256xf32, #tpu.memory_space<vmem>>, vector<16x256xf32>
    tpu.vector_store %arg16[%c48_75, %c0_76], %109 {strides = array<i32>} : memref<144x256xf32, #tpu.memory_space<vmem>>, vector<16x256xf32>,
    %c64_77 = arith.constant 64 : index
    %c0_78 = arith.constant 0 : index
    %111 = vector.load %arg16[%c64_77, %c0_78] : memref<144x256xf32, #tpu.memory_space<vmem>>, vector<16x256xf32>
    tpu.vector_store %arg16[%c64_77, %c0_78], %90 {strides = array<i32>} : memref<144x256xf32, #tpu.memory_space<vmem>>, vector<16x256xf32>,
    %c255_i32_79 = arith.constant 255 : i32
    %112 = tpu.dynamic_rotate %90 by %c255_i32_79 dim 1 : vector<16x256xf32>, i32 -> vector<16x256xf32>
    %c5_80 = arith.constant 5 : index
    %c0_81 = arith.constant 0 : index
    %113 = vector.load %arg12[%c5_80, %c0_81] : memref<9x256xf32, #tpu.memory_space<vmem>>, vector<1x256xf32>
    %114 = vector.broadcast %113 : vector<1x256xf32> to vector<16x256xf32>
    %115 = arith.mulf %112, %114 : vector<16x256xf32>
    %c80_82 = arith.constant 80 : index
    %c0_83 = arith.constant 0 : index
    %116 = vector.load %arg16[%c80_82, %c0_83] : memref<144x256xf32, #tpu.memory_space<vmem>>, vector<16x256xf32>
    tpu.vector_store %arg16[%c80_82, %c0_83], %115 {strides = array<i32>} : memref<144x256xf32, #tpu.memory_space<vmem>>, vector<16x256xf32>,
    %c241_i32_84 = arith.constant 241 : i32
    %117 = tpu.dynamic_rotate %90 by %c241_i32_84 dim 1 : vector<16x256xf32>, i32 -> vector<16x256xf32>
    %c6_85 = arith.constant 6 : index
    %c0_86 = arith.constant 0 : index
    %118 = vector.load %arg12[%c6_85, %c0_86] : memref<9x256xf32, #tpu.memory_space<vmem>>, vector<1x256xf32>
    %119 = vector.broadcast %118 : vector<1x256xf32> to vector<16x256xf32>
    %120 = arith.mulf %117, %119 : vector<16x256xf32>
    %c96_87 = arith.constant 96 : index
    %c0_88 = arith.constant 0 : index
    %121 = vector.load %arg16[%c96_87, %c0_88] : memref<144x256xf32, #tpu.memory_space<vmem>>, vector<16x256xf32>
    tpu.vector_store %arg16[%c96_87, %c0_88], %120 {strides = array<i32>} : memref<144x256xf32, #tpu.memory_space<vmem>>, vector<16x256xf32>,
    %c240_i32_89 = arith.constant 240 : i32
    %122 = tpu.dynamic_rotate %90 by %c240_i32_89 dim 1 : vector<16x256xf32>, i32 -> vector<16x256xf32>
    %c7_90 = arith.constant 7 : index
    %c0_91 = arith.constant 0 : index
    %123 = vector.load %arg12[%c7_90, %c0_91] : memref<9x256xf32, #tpu.memory_space<vmem>>, vector<1x256xf32>
    %124 = vector.broadcast %123 : vector<1x256xf32> to vector<16x256xf32>
    %125 = arith.mulf %122, %124 : vector<16x256xf32>
    %c112_92 = arith.constant 112 : index
    %c0_93 = arith.constant 0 : index
    %126 = vector.load %arg16[%c112_92, %c0_93] : memref<144x256xf32, #tpu.memory_space<vmem>>, vector<16x256xf32>
    tpu.vector_store %arg16[%c112_92, %c0_93], %125 {strides = array<i32>} : memref<144x256xf32, #tpu.memory_space<vmem>>, vector<16x256xf32>,
    %c239_i32_94 = arith.constant 239 : i32
    %127 = tpu.dynamic_rotate %90 by %c239_i32_94 dim 1 : vector<16x256xf32>, i32 -> vector<16x256xf32>
    %c8_95 = arith.constant 8 : index
    %c0_96 = arith.constant 0 : index
    %128 = vector.load %arg12[%c8_95, %c0_96] : memref<9x256xf32, #tpu.memory_space<vmem>>, vector<1x256xf32>
    %129 = vector.broadcast %128 : vector<1x256xf32> to vector<16x256xf32>
    %130 = arith.mulf %127, %129 : vector<16x256xf32>
    %c128_97 = arith.constant 128 : index
    %c0_98 = arith.constant 0 : index
    %131 = vector.load %arg16[%c128_97, %c0_98] : memref<144x256xf32, #tpu.memory_space<vmem>>, vector<16x256xf32>
    tpu.vector_store %arg16[%c128_97, %c0_98], %130 {strides = array<i32>} : memref<144x256xf32, #tpu.memory_space<vmem>>, vector<16x256xf32>,
    %c0_99 = arith.constant 0 : index
    %c0_100 = arith.constant 0 : index
    %132 = vector.load %arg11[%c0_99, %c0_100] : memref<2x144xf32, #tpu.memory_space<vmem>>, vector<2x144xf32>
    %c0_101 = arith.constant 0 : index
    %c0_102 = arith.constant 0 : index
    %133 = vector.load %arg16[%c0_101, %c0_102] : memref<144x256xf32, #tpu.memory_space<vmem>>, vector<144x256xf32>
    %cst_103 = arith.constant dense<0.000000e+00> : vector<2x256xf32>
    %134 = tpu.matmul %132, %133, %cst_103 {dimension_numbers = #tpu.dot_dimension_numbers<[1], [0], [0], [1], [0, 0, 1, 1], [], []>} : vector<2x144xf32>, vector<144x256xf32>, vector<2x256xf32> -> vector<2x256xf32>
    %c0_104 = arith.constant 0 : index
    %c0_105 = arith.constant 0 : index
    %135 = memref.load %arg0[%c0_104, %c0_105] : memref<1x1xf32, #tpu.memory_space<smem>>
    %136 = vector.broadcast %135 : f32 to vector<2x256xf32>
    %137 = arith.addf %134, %136 : vector<2x256xf32>
    %c0_106 = arith.constant 0 : index
    %c0_107 = arith.constant 0 : index
    %138 = vector.load %arg14[%c0_106, %c0_107] : memref<2x256xf32, #tpu.memory_space<vmem>>, vector<2x256xf32>
    %139 = arith.subf %137, %138 : vector<2x256xf32>
    %140 = arith.mulf %139, %139 : vector<2x256xf32>
    %cst_108 = arith.constant dense<0.000000e+00> : vector<2xf32>
    %141 = vector.multi_reduction <add>, %140, %cst_108 [1] : vector<2x256xf32> to vector<2xf32>
    %142 = vector.shape_cast %141 : vector<2xf32> to vector<2x1xf32>
    %cst_109 = arith.constant dense<0.000000e+00> : vector<1xf32>
    %143 = vector.multi_reduction <add>, %142, %cst_109 [0] : vector<2x1xf32> to vector<1xf32>
    %144 = vector.shape_cast %143 : vector<1xf32> to vector<1x1xf32>
    %cst_110 = arith.constant 0.001953125 : f32
    %145 = vector.broadcast %cst_110 : f32 to vector<1x1xf32>
    %146 = arith.mulf %144, %145 : vector<1x1xf32>
    %c0_111 = arith.constant 0 : index
    %c0_112 = arith.constant 0 : index
    %147 = vector.load %arg15[%c0_111, %c0_112] : memref<1x1xf32, #tpu.memory_space<vmem>>, vector<1x1xf32>
    tpu.vector_store %arg15[%c0_111, %c0_112], %146 {strides = array<i32>} : memref<1x1xf32, #tpu.memory_space<vmem>>, vector<1x1xf32>,
    return
  }
}

</mosaic_0001>

<bundles_post_ra>
// kernel: ddpm_forward.21
= control target key start
LH: loop header
LB: loop body
LE: loop exit
PB: predicated region body
PF: predicated region fallthrough
CT: control target
= control target key end

     0   :  { %v1517_v2 = vmov 0.0|0.0   ;;  %vm1518_vm0 = vmmov 0   ;;  %v1519_v4 = vmov 0.0   ;;  %s2198_s0 = inlined_call_operand.<no memory space> [shape: f32[1,1], index: 0, kind: input, shape index: {}]   ;;  %s2199_s1 = inlined_call_operand.vmem [shape: f32[2,1], index: 1, kind: input, shape index: {}]   ;;  %s2200_s2 = inlined_call_operand.vmem [shape: f32[2,1], index: 2, kind: input, shape index: {}]   ;;  %s2201_s3 = inlined_call_operand.vmem [shape: f32[2,16], index: 3, kind: input, shape index: {}]   ;;  %s2202_s4 = inlined_call_operand.vmem [shape: f32[16,32], index: 4, kind: input, shape index: {}]   ;;  %s2203_s5 = inlined_call_operand.vmem [shape: f32[1,32], index: 5, kind: input, shape index: {}]   ;;  %s2204_s6 = inlined_call_operand.vmem [shape: f32[32,8], index: 6, kind: input, shape index: {}]   ;;  %s2205_s7 = inlined_call_operand.vmem [shape: f32[16,2], index: 7, kind: input, shape index: {}]   ;;  %s2206_s8 = inlined_call_operand.vmem [shape: f32[16,8], index: 8, kind: input, shape index: {}]   ;;  %s2207_s9 = inlined_call_operand.vmem [shape: f32[16,1], index: 9, kind: input, shape index: {}]   ;;  %s2208_s10 = inlined_call_operand.vmem [shape: f32[16,144], index: 10, kind: input, shape index: {}]   ;;  %s2209_s11 = inlined_call_operand.vmem [shape: f32[2,144], index: 11, kind: input, shape index: {}]   ;;  %s2210_s12 = inlined_call_operand.vmem [shape: f32[9,256], index: 12, kind: input, shape index: {}]   ;;  %s2211_s13 = inlined_call_operand.vmem [shape: f32[2,256], index: 13, kind: input, shape index: {}]   ;;  %s2212_s14 = inlined_call_operand.vmem [shape: f32[2,256], index: 14, kind: input, shape index: {}]   ;;  %s2213_s15 = inlined_call_operand.hbm [shape: f32[1,1], index: 15, kind: output, shape index: {}]  }
   0x1   :  { %v97_v0 = vld [vmem:[%s2202_s4] sm:$0xff]  ;;  %v98_v1 = vld [vmem:[%s2202_s4 + $0x8] sm:$0xff]  ;;  %1376 = vmatprep.subr.bf16.mxu0 %v1517_v2  ;;  %1357 = vmatprep.mubr.msk.f32.mxu0 %vm1518_vm0, %v1519_v4 }
   0x2   :  { %v1377_v3 = vpack.c.bf16 %v98_v1, %v97_v0 }
   0x3   :  { %21 = vsyncpa [#allocation5], 0  ;;  %1379 = vmatprep.subr.bf16.mxu1 %v1517_v2  ;;  %1368 = vmatprep.mubr.msk.f32.mxu1 %vm1518_vm0, %v1519_v4  ;;  %v96_v5 = vld [vmem:[%s2201_s3] sm:$0x3]  ;;  %vm106_vm1 = vcmask 130048   ;;  %v187_v7 = vld [vmem:[%s2204_s6 + $0x8] sm:$0xff]  ;;  %v65_v28 = vlaneseq }
   0x4   :  { %1378 = vmatpush3.bf16.msra.mxu0 %v1377_v3  ;;  %v186_v6 = vld [vmem:[%s2204_s6] sm:$0xff]  ;;  %v188_v9 = vld [vmem:[%s2204_s6 + $0x10] sm:$0xff]  ;;  %v189_v10 = vld [vmem:[%s2204_s6 + $0x18] sm:$0xff]  ;;  %v1520_v13 = vmov 0   ;;  %vm190_vm2 = vcmask 261120   ;;  %vm266_vm3 = vcmask 15360  }
   0x5   :  { %v1380_v8 = vpack.c.bf16 %v187_v7, %v186_v6  ;;  %v1383_v11 = vpack.c.bf16 %v189_v10, %v188_v9  ;;  %v52_v12 = vld [vmem:[%s2199_s1] sm:$0x3]  ;;  %1471 = vset.pattern.permute.xlu0 %v1520_v13  ;;  %1472 = vset.pattern.permute.xlu1 %v1520_v13  ;;  %v1521_v26 = vmov 1983009808   ;;  %v1652_v32 = vshrl.u32 %v65_v28, 7  ;;  %v265_v46 = vld [vmem:[%s2205_s7 + $0x8] sm:$0xff] }
   0x6   :  { %58 = vperm.xlu0 %1471, %v52_v12   ;;  %v74_v14 = vld [vmem:[%s2200_s2] sm:$0x3]  ;;  %v63_v27 = vunpack.c.l.s4 %v1521_v26  ;;  %vm273_vm4 = vcmask 1041408   ;;  %s1524_s4 = smov 15   ;;  %s1525_s24 = smov 1   ;;  %v728_v58 = vld [vmem:[%s2208_s10 + $0x8] sm:$0xff] }
   0x7   :  { %1358 = vmatmul.mubr.msk.f32.vlgmr.msra.gmra.mrb[0].mxu0 %vm106_vm1, %v96_v5  ;;  %1381 = vmatpush3.bf16.msra.mxu1 %v1380_v8  ;;  %v1313_v15 = vld [vmem:[%s2203_s5] ss:$0 sm:$0xff]  ;;  %s1526_s25 = smov 127   ;;  %s1527_s26 = smov 113   ;;  %vm356_vm5 = vcmask 64512   ;;  %v353_v62 = vld [vmem:[%s2206_s8 + $0x8] sm:$0xff] }
   0x8   :  { %1382 = vmatprep.subr.bf16.mxu1 %v1517_v2  ;;  %v264_v25 = vld [vmem:[%s2205_s7] sm:$0xff]  ;;  %v64_v31 = vunpack.c.0.s8 %v63_v27  ;;  %s1522_s7 = smov 16   ;;  %s1528_s27 = smov 112   ;;  %v1777_v13 = vand.u32 127, %v65_v28  ;;  %vm1295_vm14 = vcmask 0  }
   0x9   :  { %1373 = vmatprep.mubr.msk.f32.mxu0 %vm266_vm3, %v264_v25  ;;  %v53_v29 = vld [vmem:[%s2211_s13] sm:$0xf]  ;;  %s1529_s28 = smov 111  }
   0xa   :  { %78 = vperm.xlu0 %1471, %v74_v14   ;;  %v54_v30 = vmul.f32 2.0, %v53_v29  ;;  %v67_v34 = vsub.s32 %v64_v31, %v1652_v32  ;;  %v1658_v37 = vld.sshfl [vmem:[%s2212_s14] sm:$0x33 pattern:$0x76325410]  ;;  %s1523_s14 = smov 17  }
   0xb   :  { %1384 = vmatpush3.bf16.msra.mxu1 %v1383_v11  ;;  %v1662_v39 = vcombine.high %v1658_v37, %v1658_v37  ;;  %v352_v59 = vld [vmem:[%s2206_s8] sm:$0xff]  ;;  %vm460_vm6 = vcmp.lt.s32.totalorder %v1777_v13, 17  ;;  %vm493_vm7 = vcmp.lt.s32.totalorder %v1777_v13, 16  ;;  %vm527_vm8 = vcmp.lt.s32.totalorder %v1777_v13, 15 }
   0xc   :  { %v1311_v33 = vadd.f32 -1.0, %v54_v30  ;;  %vm561_vm9 = vcmp.lt.s32.totalorder %v1777_v13, 1  ;;  %vm599_vm10 = vcmp.lt.s32.totalorder %v1777_v13, 127  ;;  %vm633_vm11 = vcmp.lt.s32.totalorder %v1777_v13, 113 }
   0xd   :  { %vm667_vm12 = vcmp.lt.s32.totalorder %v1777_v13, 112  ;;  %vm701_vm13 = vcmp.lt.s32.totalorder %v1777_v13, 111 }
   0xe   :  { %v68_v36 = vrot.slane %v1311_v33, %v67_v34  ;;  %v1324_v34 = vld [vmem:[%s2210_s12 + $0x2] ss:$8 sm:$0x3] }
  0x10   :  { %v69_v38 = vcombine.high %v68_v36, %v68_v36 }
  0x85   :  { %v59_v35 = vpop.permute.xlu0 %58 }
  0x86   :  { %v73_v41 = vmul.f32 %v69_v38, %v59_v35  ;;  %v72_v43 = vmul.f32 %v68_v36, %v59_v35 }
  0x89   :  { %v79_v40 = vpop.permute.xlu0 %78 }
  0x8a   :  { %v93_v42 = vmul.f32 %v1662_v39, %v79_v40  ;;  %v92_v44 = vmul.f32 %v1658_v37, %v79_v40 }
  0x8c   :  { %v95_v47 = vadd.f32 %v93_v42, %v73_v41  ;;  %v94_v49 = vadd.f32 %v92_v44, %v72_v43 }
  0xda   :  { %v176_v16 = vpop.f32.mrb[0].mxu0 }
  0xdb   :  { %v177_v17 = vadd.f32 %v1313_v15, %v176_v16  ;;  %v1359_v18 = vpop.f32.mrb[1].mxu0  ;;  %v1782_v16 = vsub.s32 0, %v1652_v32 }
  0xdc   :  { %v465_v18 = vld [vmem:[%s2210_s12] ss:$8 sm:$0x3] }
  0xdd   :  { %v180_v19 = vsub.f32 0.0, %v177_v17 }
  0xdf   :  { %v181_v20 = vmul.f32 1.442695, %v180_v19 }
  0xe1   :  { %1473 = vpow2.f32 %v181_v20 }
  0xeb   :  { %v1474_v21 = vpop.eup %1473 }
  0xec   :  { %v183_v22 = vadd.f32 1.0, %v1474_v21  ;;  %v470_v21 = vrot.slane %v465_v18, %v1782_v16 }
  0xee   :  { %1475 = vrcp.f32 %v183_v22 }
  0xf8   :  { %v1476_v23 = vpop.eup %1475 }
  0xf9   :  { %v185_v24 = vmul.f32 %v1476_v23, %v177_v17  ;;  %v1785_v17 = vsub.s32 1, %v1652_v32  ;;  %v1323_v23 = vld [vmem:[%s2210_s12 + $0x1] ss:$8 sm:$0x3] }
  0xfa   :  { %v504_v28 = vrot.slane %v1323_v23, %v1782_v16 }
  0xfb   :  { %1369 = vmatmul.mubr.msk.f32.vlgmr.msra.gmra.mrb[0].mxu1 %vm190_vm2, %v185_v24  ;;  %v474_v22 = vrot.slane %v465_v18, %v1785_v17  ;;  %v508_v29 = vrot.slane %v1323_v23, %v1785_v17 }
  0xfc   :  { %1330 = vmatprep.mubr.msk.f32.mxu1 %vm106_vm1, %v728_v58 }
 0x1ce   :  { %v260_v45 = vpop.f32.mrb[0].mxu1 }
 0x1cf   :  { %v1370_v48 = vpop.f32.mrb[1].mxu1  ;;  %1371 = vmatprep.subr.msk.mxu0 %vm273_vm4, %v260_v45 }
 0x1d0   :  { %1372 = vmatpush3.msk.msra.mxu0 %vm273_vm4, %v260_v45  ;;  %v538_v45 = vrot.slane %v1324_v34, %v1782_v16 }
 0x1d1   :  { %1374 = vmatmul.mubr.msk.f32.vlgmr.msra.gmra.mrb[2].mxu0 %vm266_vm3, %v265_v46  ;;  %1319 = vmatprep.subr.msk.mxu0 %vm273_vm4, %v95_v47 }
 0x1d2   :  { %1320 = vmatpush1.msk.msra.mxu0 %vm273_vm4, %v94_v49  ;;  %437 = vmatprep.mubr.f32.mxu0 %v1519_v4 }
 0x1d5   :  { %1321 = vmatmul.mubr.msk.f32.vlgmr.msra.gmra.mrb[4].mxu0 %vm266_vm3, %v264_v25 }
 0x1d6   :  { %443 = vmatprep.mubr.f32.mxu0 %v1519_v4 }
 0x1d9   :  { %1322 = vmatmul.mubr.msk.f32.gmra.mrb[6].mxu0 %vm266_vm3, %v265_v46  ;;  %v542_v46 = vrot.slane %v1324_v34, %v1785_v17 }
 0x2a4   :  { %v1375_v50 = vpop.f32.mrb[2].mxu0 }
 0x2a5   :  { %v343_v51 = vpop.f32.mrb[3].mxu0  ;;  %v355_v63 = vmul.f32 %v1375_v50, %v353_v62 }
 0x2a6   :  { %v354_v60 = vmul.f32 %v352_v59, %v343_v51  ;;  %v1325_v51 = vld [vmem:[%s2210_s12 + $0x3] ss:$8 sm:$0x3] }
 0x2a7   :  { %v360_v0 = vsel %vm356_vm5, %v355_v63, 0.0 }
 0x2a8   :  { %v1678_v52 = vpop.f32.mrb[4].mxu0  ;;  %v357_v61 = vsel %vm356_vm5, %v354_v60, 0.0 }
 0x2a9   :  { %485 = vrot.lane.b32.xlu0 %v1678_v52, %s1522_s7  ;;  %450 = vrot.lane.b32.xlu1 %v1678_v52, %s1523_s14  ;;  %v1684_v53 = vpop.f32.mrb[5].mxu0 }
 0x2ac   :  { %v1686_v54 = vpop.f32.mrb[6].mxu0 }
 0x2ad   :  { %519 = vrot.lane.b32.xlu0 %v1678_v52, %s1524_s4  ;;  %452 = vrot.lane.b32.xlu1 %v1686_v54, %s1523_s14  ;;  %v1692_v55 = vpop.f32.mrb[7].mxu0  ;;  %v1403_v56 = vpack.c.bf16 %v1686_v54, %v1678_v52 }
 0x2ae   :  { %v1401_v57 = vpack.c.bf16 %v1692_v55, %v1684_v53 }
 0x2b1   :  { %553 = vrot.lane.b32.xlu0 %v1678_v52, %s1525_s24  ;;  %487 = vrot.lane.b32.xlu1 %v1686_v54, %s1522_s7 }
 0x2b5   :  { %591 = vrot.lane.b32.xlu0 %v1678_v52, %s1526_s25  ;;  %521 = vrot.lane.b32.xlu1 %v1686_v54, %s1524_s4 }
 0x2b9   :  { %625 = vrot.lane.b32.xlu0 %v1678_v52, %s1527_s26  ;;  %555 = vrot.lane.b32.xlu1 %v1686_v54, %s1525_s24 }
 0x2bd   :  { %659 = vrot.lane.b32.xlu0 %v1678_v52, %s1528_s27  ;;  %593 = vrot.lane.b32.xlu1 %v1686_v54, %s1526_s25 }
 0x2c1   :  { %454 = vrot.lane.b32.xlu0 %v1684_v53, %s1523_s14  ;;  %627 = vrot.lane.b32.xlu1 %v1686_v54, %s1527_s26 }
 0x2c5   :  { %489 = vrot.lane.b32.xlu0 %v1684_v53, %s1522_s7  ;;  %661 = vrot.lane.b32.xlu1 %v1686_v54, %s1528_s27 }
 0x2c9   :  { %523 = vrot.lane.b32.xlu0 %v1684_v53, %s1524_s4  ;;  %456 = vrot.lane.b32.xlu1 %v1692_v55, %s1523_s14 }
 0x2cd   :  { %557 = vrot.lane.b32.xlu0 %v1684_v53, %s1525_s24  ;;  %491 = vrot.lane.b32.xlu1 %v1692_v55, %s1522_s7 }
 0x2d1   :  { %693 = vrot.lane.b32.xlu0 %v1678_v52, %s1529_s28  ;;  %525 = vrot.lane.b32.xlu1 %v1692_v55, %s1524_s4 }
 0x2d5   :  { %595 = vrot.lane.b32.xlu0 %v1684_v53, %s1526_s25  ;;  %559 = vrot.lane.b32.xlu1 %v1692_v55, %s1525_s24 }
 0x2d9   :  { %629 = vrot.lane.b32.xlu0 %v1684_v53, %s1527_s26  ;;  %695 = vrot.lane.b32.xlu1 %v1686_v54, %s1529_s28  ;;  %v1329_v54 = vld [vmem:[%s2210_s12 + $0x10] ss:$8 sm:$0x3] }
 0x2dd   :  { %663 = vrot.lane.b32.xlu0 %v1684_v53, %s1528_s27  ;;  %597 = vrot.lane.b32.xlu1 %v1692_v55, %s1526_s25 }
 0x2e1   :  { %697 = vrot.lane.b32.xlu0 %v1684_v53, %s1529_s28  ;;  %631 = vrot.lane.b32.xlu1 %v1692_v55, %s1527_s26 }
 0x2e5   :  { %665 = vrot.lane.b32.xlu1 %v1692_v55, %s1528_s27 }
 0x2e9   :  { %699 = vrot.lane.b32.xlu1 %v1692_v55, %s1529_s28 }
 0x300   :  { %358 = vadd.xlane.f32.xlu0 %v357_v61 }
 0x30d   :  { %361 = vadd.xlane.f32.xlu1 %v360_v0 }
 0x31b   :  { %v486_v1 = vpop.permute.xlu0 %485  ;;  %v451_v2 = vpop.permute.xlu1 %450 }
 0x31f   :  { %v520_v3 = vpop.permute.xlu0 %519  ;;  %v453_v4 = vpop.permute.xlu1 %452 }
 0x323   :  { %v1764_v5 = vpop.permute.xlu0 %553  ;;  %v488_v6 = vpop.permute.xlu1 %487 }
 0x327   :  { %v1766_v7 = vpop.permute.xlu0 %591  ;;  %v522_v8 = vpop.permute.xlu1 %521 }
 0x32b   :  { %v1768_v9 = vpop.permute.xlu0 %625  ;;  %v1770_v10 = vpop.permute.xlu1 %555 }
 0x32f   :  { %v1772_v11 = vpop.permute.xlu0 %659  ;;  %v1774_v12 = vpop.permute.xlu1 %593 }
 0x333   :  { %v455_v14 = vpop.permute.xlu0 %454  ;;  %v1779_v15 = vpop.permute.xlu1 %627 }
 0x334   :  { %v461_v24 = vsel %vm460_vm6, %v451_v2, %v455_v14  ;;  %v463_v25 = vsel %vm460_vm6, %v455_v14, %v451_v2  ;;  %v572_v2 = vrot.slane %v1325_v51, %v1782_v16 }
 0x335   :  { %v477_v32 = vmul.f32 %v470_v21, %v463_v25  ;;  %v478_v33 = vmul.f32 %v474_v22, %v461_v24 }
 0x337   :  { %v490_v19 = vpop.permute.xlu0 %489  ;;  %v1791_v20 = vpop.permute.xlu1 %661 }
 0x338   :  { %v494_v38 = vsel %vm493_vm7, %v486_v1, %v490_v19  ;;  %v496_v40 = vsel %vm493_vm7, %v490_v19, %v486_v1 }
 0x339   :  { %v511_v49 = vmul.f32 %v504_v28, %v496_v40  ;;  %v512_v50 = vmul.f32 %v508_v29, %v494_v38  ;;  %v1327_v40 = vld [vmem:[%s2210_s12 + $0x6] ss:$8 sm:$0x3] }
 0x33b   :  { %v524_v26 = vpop.permute.xlu0 %523  ;;  %v457_v27 = vpop.permute.xlu1 %456 }
 0x33c   :  { %v462_v30 = vsel %vm460_vm6, %v453_v4, %v457_v27  ;;  %v464_v31 = vsel %vm460_vm6, %v457_v27, %v453_v4  ;;  %v528_v60 = vsel %vm527_vm8, %v520_v3, %v524_v26  ;;  %v530_v61 = vsel %vm527_vm8, %v524_v26, %v520_v3 }
 0x33d   :  { %v479_v35 = vmul.f32 %v470_v21, %v464_v31  ;;  %v480_v36 = vmul.f32 %v474_v22, %v462_v30  ;;  %v576_v4 = vrot.slane %v1325_v51, %v1785_v17  ;;  %v545_v18 = vmul.f32 %v538_v45, %v530_v61 }
 0x33e   :  { %v546_v3 = vmul.f32 %v542_v46, %v528_v60 }
 0x33f   :  { %v1387_v41 = vpack.c.bf16 %v479_v35, %v477_v32  ;;  %v558_v42 = vpop.permute.xlu0 %557  ;;  %v492_v43 = vpop.permute.xlu1 %491  ;;  %v1385_v44 = vpack.c.bf16 %v480_v36, %v478_v33 }
 0x340   :  { %v495_v47 = vsel %vm493_vm7, %v488_v6, %v492_v43  ;;  %v497_v48 = vsel %vm493_vm7, %v492_v43, %v488_v6  ;;  %v562_v22 = vsel %vm561_vm9, %v1764_v5, %v558_v42  ;;  %v564_v23 = vsel %vm561_vm9, %v558_v42, %v1764_v5  ;;  %v1326_v5 = vld [vmem:[%s2210_s12 + $0x5] ss:$8 sm:$0x3] }
 0x341   :  { %v513_v58 = vmul.f32 %v504_v28, %v497_v48  ;;  %v514_v59 = vmul.f32 %v508_v29, %v495_v47  ;;  %1386 = vmatprep.subr.bf16.mxu1 %v1385_v44  ;;  %v579_v29 = vmul.f32 %v572_v2, %v564_v23  ;;  %v580_v30 = vmul.f32 %v576_v4, %v562_v22 }
 0x342   :  { %1388 = vmatpush1.bf16.msra.mxu1 %v1387_v41  ;;  %v610_v38 = vrot.slane %v1326_v5, %v1782_v16  ;;  %v644_v44 = vrot.slane %v1327_v40, %v1782_v16 }
 0x343   :  { %v1391_v62 = vpack.c.bf16 %v513_v58, %v511_v49  ;;  %v1831_v63 = vpop.permute.xlu0 %693  ;;  %v526_v0 = vpop.permute.xlu1 %525  ;;  %v1389_v1 = vpack.c.bf16 %v514_v59, %v512_v50  ;;  %v1328_v49 = vld [vmem:[%s2210_s12 + $0x7] ss:$8 sm:$0x3] }
 0x344   :  { %v529_v6 = vsel %vm527_vm8, %v522_v8, %v526_v0  ;;  %v531_v14 = vsel %vm527_vm8, %v526_v0, %v522_v8  ;;  %v678_v60 = vrot.slane %v1328_v49, %v1782_v16  ;;  %v682_v61 = vrot.slane %v1328_v49, %v1785_v17 }
 0x345   :  { %v547_v19 = vmul.f32 %v538_v45, %v531_v14  ;;  %v548_v21 = vmul.f32 %v542_v46, %v529_v6  ;;  %1390 = vmatprep.subr.bf16.mxu1 %v1389_v1  ;;  %v648_v45 = vrot.slane %v1327_v40, %v1785_v17 }
 0x346   :  { %1392 = vmatpush1.bf16.msra.mxu1 %v1391_v62 }
 0x347   :  { %v1395_v24 = vpack.c.bf16 %v547_v19, %v545_v18  ;;  %v596_v25 = vpop.permute.xlu0 %595  ;;  %v560_v26 = vpop.permute.xlu1 %559  ;;  %v1393_v27 = vpack.c.bf16 %v548_v21, %v546_v3  ;;  %v712_v3 = vrot.slane %v1329_v54, %v1782_v16  ;;  %v716_v19 = vrot.slane %v1329_v54, %v1785_v17 }
 0x348   :  { %v563_v8 = vsel %vm561_vm9, %v1770_v10, %v560_v26  ;;  %v565_v28 = vsel %vm561_vm9, %v560_v26, %v1770_v10  ;;  %v614_v10 = vrot.slane %v1326_v5, %v1785_v17  ;;  %v600_v41 = vsel %vm599_vm10, %v1766_v7, %v596_v25 }
 0x349   :  { %v581_v31 = vmul.f32 %v572_v2, %v565_v28  ;;  %v582_v32 = vmul.f32 %v576_v4, %v563_v8  ;;  %1394 = vmatprep.subr.bf16.mxu1 %v1393_v27  ;;  %v602_v42 = vsel %vm599_vm10, %v596_v25, %v1766_v7  ;;  %v617_v47 = vmul.f32 %v610_v38, %v600_v41 }
 0x34a   :  { %1396 = vmatpush1.bf16.msra.mxu1 %v1395_v24  ;;  %v618_v48 = vmul.f32 %v614_v10, %v602_v42  ;;  %v364_v42 = vld [vmem:[%s2207_s9 + $0x8] sm:$0xff] }
 0x34b   :  { %v1399_v33 = vpack.c.bf16 %v581_v31, %v579_v29  ;;  %v630_v34 = vpop.permute.xlu0 %629  ;;  %v1855_v35 = vpop.permute.xlu1 %695  ;;  %v1397_v36 = vpack.c.bf16 %v582_v32, %v580_v30 }
 0x34c   :  { %v634_v50 = vsel %vm633_vm11, %v1768_v9, %v630_v34  ;;  %v636_v51 = vsel %vm633_vm11, %v630_v34, %v1768_v9 }
 0x34d   :  { %1398 = vmatprep.subr.bf16.mxu1 %v1397_v36  ;;  %v651_v0 = vmul.f32 %v644_v44, %v634_v50  ;;  %v652_v52 = vmul.f32 %v648_v45, %v636_v51  ;;  %v727_v36 = vld [vmem:[%s2208_s10] sm:$0xff] }
 0x34e   :  { %1400 = vmatpush1.bf16.msra.mxu1 %v1399_v33 }
 0x34f   :  { %v598_v43 = vpop.permute.xlu1 %597  ;;  %1402 = vmatprep.subr.bf16.mxu1 %v1401_v57  ;;  %v664_v53 = vpop.permute.xlu0 %663 }
 0x350   :  { %v601_v46 = vsel %vm599_vm10, %v1774_v12, %v598_v43  ;;  %v603_v7 = vsel %vm599_vm10, %v598_v43, %v1774_v12  ;;  %v668_v2 = vsel %vm667_vm12, %v1772_v11, %v664_v53  ;;  %v670_v4 = vsel %vm667_vm12, %v664_v53, %v1772_v11 }
 0x351   :  { %v619_v55 = vmul.f32 %v610_v38, %v601_v46  ;;  %v620_v57 = vmul.f32 %v614_v10, %v603_v7  ;;  %v685_v11 = vmul.f32 %v678_v60, %v668_v2  ;;  %v686_v23 = vmul.f32 %v682_v61, %v670_v4  ;;  %v730_v38 = vld [vmem:[%s2208_s10 + $0x18] sm:$0xff]  ;;  %v363_v10 = vld [vmem:[%s2207_s9] sm:$0xff] }
 0x352   :  { %1404 = vmatpush1.bf16.msra.mxu1 %v1403_v56 }
 0x353   :  { %v1407_v12 = vpack.c.bf16 %v619_v55, %v617_v47  ;;  %v632_v58 = vpop.permute.xlu1 %631  ;;  %v1405_v59 = vpack.c.bf16 %v620_v57, %v618_v48 }
 0x354   :  { %v635_v62 = vsel %vm633_vm11, %v1779_v15, %v632_v58  ;;  %v637_v9 = vsel %vm633_vm11, %v632_v58, %v1779_v15  ;;  %v698_v15 = vpop.permute.xlu0 %697 }
 0x355   :  { %v653_v56 = vmul.f32 %v644_v44, %v635_v62  ;;  %v654_v1 = vmul.f32 %v648_v45, %v637_v9  ;;  %1406 = vmatprep.subr.bf16.mxu1 %v1405_v59  ;;  %v702_v26 = vsel %vm701_vm13, %v1831_v63, %v698_v15  ;;  %v704_v27 = vsel %vm701_vm13, %v698_v15, %v1831_v63 }
 0x356   :  { %1408 = vmatpush1.bf16.msra.mxu1 %v1407_v12  ;;  %v719_v31 = vmul.f32 %v712_v3, %v702_v26  ;;  %v720_v32 = vmul.f32 %v716_v19, %v704_v27 }
 0x357   :  { %v1411_v6 = vpack.c.bf16 %v653_v56, %v651_v0  ;;  %v666_v14 = vpop.permute.xlu1 %665  ;;  %v1409_v18 = vpack.c.bf16 %v654_v1, %v652_v52 }
 0x358   :  { %v669_v21 = vsel %vm667_vm12, %v1791_v20, %v666_v14  ;;  %v671_v22 = vsel %vm667_vm12, %v666_v14, %v1791_v20 }
 0x359   :  { %v687_v24 = vmul.f32 %v678_v60, %v669_v21  ;;  %v688_v25 = vmul.f32 %v682_v61, %v671_v22  ;;  %1410 = vmatprep.subr.bf16.mxu1 %v1409_v18 }
 0x35a   :  { %1412 = vmatpush1.bf16.msra.mxu1 %v1411_v6 }
 0x35b   :  { %v1415_v8 = vpack.c.bf16 %v687_v24, %v685_v11  ;;  %v700_v28 = vpop.permute.xlu1 %699  ;;  %v1413_v29 = vpack.c.bf16 %v688_v25, %v686_v23  ;;  %v2020_v25 = vld.sshfl [vmem:[%s2209_s11] sm:$0x33 pattern:$0x76325410] }
 0x35c   :  { %v703_v20 = vsel %vm701_vm13, %v1855_v35, %v700_v28  ;;  %v705_v30 = vsel %vm701_vm13, %v700_v28, %v1855_v35  ;;  %v729_v35 = vld [vmem:[%s2208_s10 + $0x10] sm:$0xff]  ;;  %v1191_v26 = vcombine.high %v2020_v25, %v2020_v25 }
 0x35d   :  { %v721_v5 = vmul.f32 %v712_v3, %v703_v20  ;;  %v722_v33 = vmul.f32 %v716_v19, %v705_v30  ;;  %1414 = vmatprep.subr.bf16.mxu1 %v1413_v29 }
 0x35e   :  { %1416 = vmatpush1.bf16.msra.mxu1 %v1415_v8  ;;  %1340 = vmatprep.mubr.msk.f32.mxu0 %vm106_vm1, %v1191_v26 }
 0x35f   :  { %v1419_v34 = vpack.c.bf16 %v721_v5, %v719_v31  ;;  %v1417_v63 = vpack.c.bf16 %v722_v33, %v720_v32 }
 0x361   :  { %1418 = vmatprep.subr.bf16.mxu1 %v1417_v63 }
 0x362   :  { %1420 = vmatpush1.bf16.msra.mxu1 %v1419_v34 }
 0x365   :  { %848 = vmatmul.mubr.f32.vlgmr.msra.gmra.mrb[2].mxu1 %v727_v36 }
 0x366   :  { %1331 = vmatprep.mubr.msk.f32.mxu1 %vm106_vm1, %v730_v38  ;;  %v896_v38 = vld [vmem:[%s2210_s12] ss:$8 sm:$0x3] }
 0x369   :  { %854 = vmatmul.mubr.f32.gmra.mrb[4].mxu1 %v729_v35 }
 0x38d   :  { %v359_v40 = vpop.xlane.xlu0 %358 }
 0x38e   :  { %v365_v41 = vadd.f32 %v363_v10, %v359_v40  ;;  %v901_v40 = vrot.slane %v896_v38, %v1782_v16 }
 0x390   :  { %769 = vperm.xlu0 %1471, %v365_v41   ;;  %v905_v41 = vrot.slane %v896_v38, %v1785_v17 }
 0x39a   :  { %v362_v43 = vpop.xlane.xlu1 %361 }
 0x39b   :  { %v366_v44 = vadd.f32 %v364_v42, %v362_v43  ;;  %v1332_v42 = vld [vmem:[%s2210_s12 + $0x1] ss:$8 sm:$0x3] }
 0x39d   :  { %774 = vperm.xlu1 %1472, %v366_v44  }
 0x40f   :  { %v770_v45 = vpop.permute.xlu0 %769 }
 0x41c   :  { %v775_v53 = vpop.permute.xlu1 %774 }
 0x438   :  { %v849_v46 = vpop.f32.mrb[2].mxu1 }
 0x439   :  { %v850_v7 = vadd.f32 %v849_v46, %v770_v45  ;;  %v851_v47 = vpop.f32.mrb[3].mxu1 }
 0x43a   :  { %v852_v48 = vadd.f32 %v851_v47, %v770_v45 }
 0x43b   :  { %v860_v49 = vsub.f32 0.0, %v850_v7 }
 0x43c   :  { %v861_v55 = vsub.f32 0.0, %v852_v48  ;;  %v855_v57 = vpop.f32.mrb[4].mxu1 }
 0x43d   :  { %v864_v50 = vmul.f32 1.442695, %v860_v49  ;;  %v856_v51 = vadd.f32 %v855_v57, %v775_v53  ;;  %v857_v12 = vpop.f32.mrb[5].mxu1  ;;  %v937_v49 = vrot.slane %v1332_v42, %v1785_v17 }
 0x43e   :  { %v866_v58 = vmul.f32 1.442695, %v861_v55  ;;  %v858_v59 = vadd.f32 %v857_v12, %v775_v53 }
 0x43f   :  { %1477 = vpow2.f32 %v864_v50  ;;  %v862_v60 = vsub.f32 0.0, %v856_v51 }
 0x440   :  { %1479 = vpow2.f32 %v866_v58  ;;  %v863_v61 = vsub.f32 0.0, %v858_v59 }
 0x441   :  { %v868_v62 = vmul.f32 1.442695, %v862_v60 }
 0x442   :  { %v870_v9 = vmul.f32 1.442695, %v863_v61 }
 0x443   :  { %1481 = vpow2.f32 %v868_v62 }
 0x444   :  { %1483 = vpow2.f32 %v870_v9 }
 0x449   :  { %v1478_v0 = vpop.eup %1477 }
 0x44a   :  { %v1480_v52 = vpop.eup %1479  ;;  %v872_v54 = vadd.f32 1.0, %v1478_v0 }
 0x44b   :  { %v873_v56 = vadd.f32 1.0, %v1480_v52 }
 0x44c   :  { %1485 = vrcp.f32 %v872_v54 }
 0x44d   :  { %v1482_v1 = vpop.eup %1481  ;;  %1487 = vrcp.f32 %v873_v56 }
 0x44e   :  { %v1484_v2 = vpop.eup %1483  ;;  %v874_v4 = vadd.f32 1.0, %v1482_v1 }
 0x44f   :  { %v875_v15 = vadd.f32 1.0, %v1484_v2 }
 0x450   :  { %1489 = vrcp.f32 %v874_v4 }
 0x451   :  { %1491 = vrcp.f32 %v875_v15  ;;  %v1334_v15 = vld [vmem:[%s2210_s12 + $0x3] ss:$8 sm:$0x3] }
 0x452   :  { %v1001_v38 = vrot.slane %v1334_v15, %v1785_v17 }
 0x456   :  { %v1486_v6 = vpop.eup %1485 }
 0x457   :  { %v1947_v14 = vmul.f32 %v1486_v6, %v850_v7  ;;  %v1488_v18 = vpop.eup %1487 }
 0x458   :  { %v1953_v22 = vmul.f32 %v1488_v18, %v852_v48  ;;  %v933_v48 = vrot.slane %v1332_v42, %v1782_v16 }
 0x459   :  { %884 = vrot.lane.b32.xlu0 %v1947_v14, %s1523_s14 }
 0x45a   :  { %v1490_v3 = vpop.eup %1489 }
 0x45b   :  { %v1492_v19 = vpop.eup %1491  ;;  %v1951_v21 = vmul.f32 %v1490_v3, %v856_v51  ;;  %v1333_v51 = vld [vmem:[%s2210_s12 + $0x2] ss:$8 sm:$0x3] }
 0x45c   :  { %v1955_v11 = vmul.f32 %v1492_v19, %v858_v59  ;;  %v965_v52 = vrot.slane %v1333_v51, %v1782_v16  ;;  %v969_v54 = vrot.slane %v1333_v51, %v1785_v17 }
 0x45d   :  { %886 = vrot.lane.b32.xlu1 %v1951_v21, %s1523_s14  ;;  %916 = vrot.lane.b32.xlu0 %v1947_v14, %s1522_s7  ;;  %v1439_v23 = vpack.c.bf16 %v1951_v21, %v1947_v14 }
 0x45e   :  { %v1437_v24 = vpack.c.bf16 %v1955_v11, %v1953_v22 }
 0x461   :  { %918 = vrot.lane.b32.xlu1 %v1951_v21, %s1522_s7  ;;  %948 = vrot.lane.b32.xlu0 %v1947_v14, %s1524_s4 }
 0x465   :  { %950 = vrot.lane.b32.xlu1 %v1951_v21, %s1524_s4  ;;  %980 = vrot.lane.b32.xlu0 %v1947_v14, %s1525_s24 }
 0x469   :  { %982 = vrot.lane.b32.xlu1 %v1951_v21, %s1525_s24  ;;  %1016 = vrot.lane.b32.xlu0 %v1947_v14, %s1526_s25 }
 0x46d   :  { %1018 = vrot.lane.b32.xlu1 %v1951_v21, %s1526_s25  ;;  %1048 = vrot.lane.b32.xlu0 %v1947_v14, %s1527_s26 }
 0x471   :  { %1050 = vrot.lane.b32.xlu1 %v1951_v21, %s1527_s26  ;;  %1080 = vrot.lane.b32.xlu0 %v1947_v14, %s1528_s27 }
 0x475   :  { %1082 = vrot.lane.b32.xlu1 %v1951_v21, %s1528_s27  ;;  %888 = vrot.lane.b32.xlu0 %v1953_v22, %s1523_s14 }
 0x479   :  { %890 = vrot.lane.b32.xlu1 %v1955_v11, %s1523_s14  ;;  %920 = vrot.lane.b32.xlu0 %v1953_v22, %s1522_s7 }
 0x47d   :  { %922 = vrot.lane.b32.xlu1 %v1955_v11, %s1522_s7  ;;  %952 = vrot.lane.b32.xlu0 %v1953_v22, %s1524_s4 }
 0x481   :  { %954 = vrot.lane.b32.xlu1 %v1955_v11, %s1524_s4  ;;  %984 = vrot.lane.b32.xlu0 %v1953_v22, %s1525_s24 }
 0x485   :  { %986 = vrot.lane.b32.xlu1 %v1955_v11, %s1525_s24  ;;  %1112 = vrot.lane.b32.xlu0 %v1947_v14, %s1529_s28 }
 0x489   :  { %1114 = vrot.lane.b32.xlu1 %v1951_v21, %s1529_s28  ;;  %1020 = vrot.lane.b32.xlu0 %v1953_v22, %s1526_s25 }
 0x48d   :  { %1022 = vrot.lane.b32.xlu1 %v1955_v11, %s1526_s25  ;;  %1052 = vrot.lane.b32.xlu0 %v1953_v22, %s1527_s26 }
 0x491   :  { %1054 = vrot.lane.b32.xlu1 %v1955_v11, %s1527_s26  ;;  %1084 = vrot.lane.b32.xlu0 %v1953_v22, %s1528_s27 }
 0x495   :  { %1086 = vrot.lane.b32.xlu1 %v1955_v11, %s1528_s27  ;;  %1116 = vrot.lane.b32.xlu0 %v1953_v22, %s1529_s28  ;;  %v1337_v22 = vld [vmem:[%s2210_s12 + $0x7] ss:$8 sm:$0x3] }
 0x499   :  { %1118 = vrot.lane.b32.xlu1 %v1955_v11, %s1529_s28 }
 0x4cb   :  { %v885_v27 = vpop.permute.xlu0 %884 }
 0x4cf   :  { %v887_v8 = vpop.permute.xlu1 %886  ;;  %v917_v28 = vpop.permute.xlu0 %916 }
 0x4d3   :  { %v919_v29 = vpop.permute.xlu1 %918  ;;  %v949_v20 = vpop.permute.xlu0 %948 }
 0x4d7   :  { %v951_v30 = vpop.permute.xlu1 %950  ;;  %v981_v31 = vpop.permute.xlu0 %980 }
 0x4db   :  { %v2031_v32 = vpop.permute.xlu1 %982  ;;  %v2033_v5 = vpop.permute.xlu0 %1016 }
 0x4df   :  { %v2035_v33 = vpop.permute.xlu1 %1018  ;;  %v2037_v34 = vpop.permute.xlu0 %1048 }
 0x4e3   :  { %v2039_v63 = vpop.permute.xlu1 %1050  ;;  %v2041_v36 = vpop.permute.xlu0 %1080 }
 0x4e7   :  { %v2046_v35 = vpop.permute.xlu1 %1082  ;;  %v889_v10 = vpop.permute.xlu0 %888 }
 0x4e8   :  { %v892_v43 = vsel %vm460_vm6, %v885_v27, %v889_v10  ;;  %v894_v44 = vsel %vm460_vm6, %v889_v10, %v885_v27 }
 0x4e9   :  { %v908_v53 = vmul.f32 %v901_v40, %v894_v44  ;;  %v909_v55 = vmul.f32 %v905_v41, %v892_v43 }
 0x4eb   :  { %v891_v45 = vpop.permute.xlu1 %890  ;;  %v921_v46 = vpop.permute.xlu0 %920 }
 0x4ec   :  { %v893_v7 = vsel %vm460_vm6, %v887_v8, %v891_v45  ;;  %v895_v47 = vsel %vm460_vm6, %v891_v45, %v887_v8  ;;  %v924_v12 = vsel %vm493_vm7, %v917_v28, %v921_v46  ;;  %v926_v58 = vsel %vm493_vm7, %v921_v46, %v917_v28 }
 0x4ed   :  { %v910_v57 = vmul.f32 %v901_v40, %v895_v47  ;;  %v911_v50 = vmul.f32 %v905_v41, %v893_v7  ;;  %v940_v56 = vmul.f32 %v933_v48, %v926_v58  ;;  %v941_v1 = vmul.f32 %v937_v49, %v924_v12 }
 0x4ef   :  { %v1423_v59 = vpack.c.bf16 %v910_v57, %v908_v53  ;;  %v923_v60 = vpop.permute.xlu1 %922  ;;  %v953_v61 = vpop.permute.xlu0 %952  ;;  %v1421_v62 = vpack.c.bf16 %v911_v50, %v909_v55 }
 0x4f0   :  { %v925_v9 = vsel %vm493_vm7, %v919_v29, %v923_v60  ;;  %v927_v0 = vsel %vm493_vm7, %v923_v60, %v919_v29  ;;  %v956_v6 = vsel %vm527_vm8, %v949_v20, %v953_v61  ;;  %v958_v18 = vsel %vm527_vm8, %v953_v61, %v949_v20 }
 0x4f1   :  { %v942_v2 = vmul.f32 %v933_v48, %v927_v0  ;;  %v943_v4 = vmul.f32 %v937_v49, %v925_v9  ;;  %1422 = vmatprep.subr.bf16.mxu0 %v1421_v62  ;;  %v997_v29 = vrot.slane %v1334_v15, %v1782_v16  ;;  %v972_v10 = vmul.f32 %v965_v52, %v958_v18 }
 0x4f2   :  { %1424 = vmatpush1.bf16.msra.mxu0 %v1423_v59  ;;  %v973_v40 = vmul.f32 %v969_v54, %v956_v6 }
 0x4f3   :  { %v1427_v3 = vpack.c.bf16 %v942_v2, %v940_v56  ;;  %v955_v19 = vpop.permute.xlu1 %954  ;;  %v985_v26 = vpop.permute.xlu0 %984  ;;  %v1425_v27 = vpack.c.bf16 %v943_v4, %v941_v1 }
 0x4f4   :  { %v957_v8 = vsel %vm527_vm8, %v951_v30, %v955_v19  ;;  %v959_v28 = vsel %vm527_vm8, %v955_v19, %v951_v30  ;;  %v988_v20 = vsel %vm561_vm9, %v981_v31, %v985_v26  ;;  %v990_v43 = vsel %vm561_vm9, %v985_v26, %v981_v31  ;;  %v1335_v31 = vld [vmem:[%s2210_s12 + $0x5] ss:$8 sm:$0x3] }
 0x4f5   :  { %v974_v41 = vmul.f32 %v965_v52, %v959_v28  ;;  %v975_v42 = vmul.f32 %v969_v54, %v957_v8  ;;  %1426 = vmatprep.subr.bf16.mxu0 %v1425_v27  ;;  %v1004_v48 = vmul.f32 %v997_v29, %v990_v43  ;;  %v1005_v49 = vmul.f32 %v1001_v38, %v988_v20 }
 0x4f6   :  { %1428 = vmatpush1.bf16.msra.mxu0 %v1427_v3  ;;  %v1033_v58 = vrot.slane %v1335_v31, %v1782_v16  ;;  %v1037_v59 = vrot.slane %v1335_v31, %v1785_v17  ;;  %v1097_v26 = vrot.slane %v1337_v22, %v1782_v16 }
 0x4f7   :  { %v1431_v44 = vpack.c.bf16 %v974_v41, %v972_v10  ;;  %v987_v45 = vpop.permute.xlu1 %986  ;;  %v2093_v46 = vpop.permute.xlu0 %1112  ;;  %v1429_v30 = vpack.c.bf16 %v975_v42, %v973_v40 }
 0x4f8   :  { %v989_v7 = vsel %vm561_vm9, %v2031_v32, %v987_v45  ;;  %v991_v47 = vsel %vm561_vm9, %v987_v45, %v2031_v32  ;;  %v1336_v32 = vld [vmem:[%s2210_s12 + $0x6] ss:$8 sm:$0x3] }
 0x4f9   :  { %v1006_v53 = vmul.f32 %v997_v29, %v991_v47  ;;  %v1007_v55 = vmul.f32 %v1001_v38, %v989_v7  ;;  %1430 = vmatprep.subr.bf16.mxu0 %v1429_v30  ;;  %v1065_v54 = vrot.slane %v1336_v32, %v1782_v16  ;;  %v1069_v56 = vrot.slane %v1336_v32, %v1785_v17 }
 0x4fa   :  { %1432 = vmatpush1.bf16.msra.mxu0 %v1431_v44 }
 0x4fb   :  { %v1435_v57 = vpack.c.bf16 %v1006_v53, %v1004_v48  ;;  %v2104_v50 = vpop.permute.xlu1 %1114  ;;  %v1021_v51 = vpop.permute.xlu0 %1020  ;;  %v1433_v12 = vpack.c.bf16 %v1007_v55, %v1005_v49 }
 0x4fc   :  { %v1024_v60 = vsel %vm599_vm10, %v2033_v5, %v1021_v51  ;;  %v1026_v61 = vsel %vm599_vm10, %v1021_v51, %v2033_v5 }
 0x4fd   :  { %1434 = vmatprep.subr.bf16.mxu0 %v1433_v12  ;;  %v1040_v5 = vmul.f32 %v1033_v58, %v1024_v60  ;;  %v1041_v1 = vmul.f32 %v1037_v59, %v1026_v61  ;;  %v1182_v12 = vstv %s2198_s0  ;;  %s1530_s0 = smov [#allocation4]  }
 0x4fe   :  { %1436 = vmatpush1.bf16.msra.mxu0 %v1435_v57  ;;  %s1303_s8 = sshll.u32 %s1530_s0, 4  ;;  %s1304_s8 = int_to_ptr.vmem [resolvable:$true] %s1303_s8 }
 0x4ff   :  { %v1023_v62 = vpop.permute.xlu1 %1022  ;;  %1438 = vmatprep.subr.bf16.mxu0 %v1437_v24  ;;  %v1053_v9 = vpop.permute.xlu0 %1052  ;;  %s1493_s19 = scalar_lea.vmem %s1304_s8, 16  ;;  %s1497_s20 = scalar_lea.vmem %s1304_s8, 32 }
 0x500   :  { %v1025_v0 = vsel %vm599_vm10, %v2035_v33, %v1023_v62  ;;  %v1027_v52 = vsel %vm599_vm10, %v1023_v62, %v2035_v33  ;;  %v1056_v11 = vsel %vm633_vm11, %v2037_v34, %v1053_v9  ;;  %v1058_v24 = vsel %vm633_vm11, %v1053_v9, %v2037_v34  ;;  %p1494_p0 = scmp.ne.s32.totalorder %s1304_s8, %s1493_s19  ;;  %p1498_p1 = scmp.lt.s32.totalorder %s1304_s8, %s1304_s8 }
 0x501   :  { %v1042_v2 = vmul.f32 %v1033_v58, %v1025_v0  ;;  %v1043_v4 = vmul.f32 %v1037_v59, %v1027_v52  ;;  %v1101_v34 = vrot.slane %v1337_v22, %v1785_v17  ;;  %v1072_v27 = vmul.f32 %v1065_v54, %v1056_v11  ;;  %p1499_p2 = scmp.lt.s32.totalorder %s1497_s20, %s1493_s19 }
 0x502   :  { %1440 = vmatpush1.bf16.msra.mxu0 %v1439_v23  ;;  %v1073_v8 = vmul.f32 %v1069_v56, %v1058_v24  ;;  %v1338_v23 = vld [vmem:[%s2210_s12 + $0x10] ss:$8 sm:$0x3] }
 0x503   :  { %v1443_v33 = vpack.c.bf16 %v1042_v2, %v1040_v5  ;;  %v1055_v15 = vpop.permute.xlu1 %1054  ;;  %v1085_v6 = vpop.permute.xlu0 %1084  ;;  %v1441_v18 = vpack.c.bf16 %v1043_v4, %v1041_v1  ;;  %v1129_v20 = vrot.slane %v1338_v23, %v1782_v16  ;;  %v1133_v43 = vrot.slane %v1338_v23, %v1785_v17  ;;  %p1500_p3 = por %p1499_p2, %p1498_p1 }
 0x504   :  { %v1057_v3 = vsel %vm633_vm11, %v2039_v63, %v1055_v15  ;;  %v1059_v19 = vsel %vm633_vm11, %v1055_v15, %v2039_v63  ;;  %v1088_v28 = vsel %vm667_vm12, %v2041_v36, %v1085_v6  ;;  %v1090_v63 = vsel %vm667_vm12, %v1085_v6, %v2041_v36 }
 0x505   :  { %v1074_v14 = vmul.f32 %v1065_v54, %v1057_v3  ;;  %v1075_v21 = vmul.f32 %v1069_v56, %v1059_v19  ;;  %1442 = vmatprep.subr.bf16.mxu0 %v1441_v18  ;;  %v1104_v44 = vmul.f32 %v1097_v26, %v1088_v28  ;;  %v1105_v45 = vmul.f32 %v1101_v34, %v1090_v63  ;;  %p1501_p4 = pnand %p1500_p3, %p1494_p0 }
 0x506   :  { %1444 = vmatpush1.bf16.msra.mxu0 %v1443_v33 }
 0x507   :  { %v1447_v29 = vpack.c.bf16 %v1074_v14, %v1072_v27  ;;  %v1087_v38 = vpop.permute.xlu1 %1086  ;;  %v1117_v10 = vpop.permute.xlu0 %1116  ;;  %v1445_v40 = vpack.c.bf16 %v1075_v21, %v1073_v8 }
 0x508   :  { %v1089_v41 = vsel %vm667_vm12, %v2046_v35, %v1087_v38  ;;  %v1091_v42 = vsel %vm667_vm12, %v1087_v38, %v2046_v35  ;;  %v1120_v7 = vsel %vm701_vm13, %v2093_v46, %v1117_v10  ;;  %v1122_v47 = vsel %vm701_vm13, %v1117_v10, %v2093_v46 }
 0x509   :  { %v1106_v36 = vmul.f32 %v1097_v26, %v1089_v41  ;;  %v1107_v30 = vmul.f32 %v1101_v34, %v1091_v42  ;;  %1446 = vmatprep.subr.bf16.mxu0 %v1445_v40  ;;  %v1136_v53 = vmul.f32 %v1129_v20, %v1120_v7  ;;  %v1137_v55 = vmul.f32 %v1133_v43, %v1122_v47 }
 0x50a   :  { %1448 = vmatpush1.bf16.msra.mxu0 %v1447_v29 }
 0x50b   :  { %v1451_v48 = vpack.c.bf16 %v1106_v36, %v1104_v44  ;;  %v1119_v35 = vpop.permute.xlu1 %1118  ;;  %v1449_v49 = vpack.c.bf16 %v1107_v30, %v1105_v45 }
 0x50c   :  { %v1121_v16 = vsel %vm701_vm13, %v2104_v50, %v1119_v35  ;;  %v1123_v17 = vsel %vm701_vm13, %v1119_v35, %v2104_v50 }
 0x50d   :  { %v1138_v31 = vmul.f32 %v1129_v20, %v1121_v16  ;;  %v1139_v57 = vmul.f32 %v1133_v43, %v1123_v17  ;;  %1450 = vmatprep.subr.bf16.mxu0 %v1449_v49 }
 0x50e   :  { %1452 = vmatpush1.bf16.msra.mxu0 %v1451_v48 }
 0x50f   :  { %v1455_v51 = vpack.c.bf16 %v1138_v31, %v1136_v53  ;;  %v1453_v46 = vpack.c.bf16 %v1139_v57, %v1137_v55 }
 0x511   :  { %1454 = vmatprep.subr.bf16.mxu0 %v1453_v46 }
 0x512   :  { %1456 = vmatpush1.bf16.msra.mxu0 %v1455_v51 }
 0x515   :  { %1260 = vmatmul.mubr.f32.vlgmr.msra.gmra.mrb[8].mxu0 %v2020_v25 }
 0x5e8   :  { %v1261_v58 = vpop.f32.mrb[8].mxu0 }
 0x5e9   :  { %v1262_v59 = vadd.f32 %v1261_v58, %v1182_v12  ;;  %v1263_v13 = vpop.f32.mrb[9].mxu0 }
 0x5ea   :  { %v1264_v50 = vadd.f32 %v1263_v13, %v1182_v12 }
 0x5eb   :  { %v1278_v32 = vsub.f32 %v1262_v59, %v1658_v37 }
 0x5ec   :  { %v1279_v60 = vsub.f32 %v1264_v50, %v1662_v39 }
 0x5ed   :  { %v1280_v61 = vmul.f32 %v1278_v32, %v1278_v32 }
 0x5ee   :  { %v1281_v62 = vmul.f32 %v1279_v60, %v1279_v60 }
 0x5ef   :  { %v1282_v9 = vsel %vm273_vm4, %v1280_v61, 0.0 }
 0x5f0   :  { %v1283_v0 = vsel %vm273_vm4, %v1281_v62, 0.0 }
 0x5f1   :  { %v1284_v52 = vadd.f32 %v1283_v0, %v1282_v9 }
 0x5f3   :  { %1285 = vadd.xlane.f32.xlu0 %v1284_v52 }
 0x680   :  { %v1286_v25 = vpop.xlane.xlu0 %1285 }
 0x681   :  { %v1287_v54 = vsel %vm273_vm4, %v1286_v25, 0.0 }
 0x682   :  { %v1288_v56 = vrot.slane %v1287_v54, 4 }
 0x684   :  { %v1289_v5 = vadd.f32 %v1288_v56, %v1287_v54 }
 0x686   :  { %v1290_v1 = vrot.slane %v1289_v5, 2 }
 0x688   :  { %v1291_v2 = vadd.f32 %v1290_v1, %v1289_v5 }
 0x68a   :  { %v1292_v4 = vrot.slane %v1291_v2, 1 }
 0x68c   :  { %v1293_v37 = vadd.f32 %v1292_v4, %v1291_v2 }
 0x68e   :  { %v1294_v39 = vmul.f32 0.001953125, %v1293_v37 }
 0x690   :  { %1296 = vst.msk [vmem:[#allocation4] sm:$0x1] %vm1295_vm14, %v1294_v39 }
 0x691   :  { %1504 = shalt.err (!%p1501_p4)
}
 0x692   :  { %s1505_s5 = scalar_lea.hbm %s2213_s15, 16 }
 0x693   :  { %p1506_p5 = scmp.ne.s32.totalorder %s2213_s15, %s1505_s5  ;;  %p1509_p6 = scmp.lt.u32.totalorder %s1505_s5, %s2213_s15 }
 0x695   :  { %p1511_p7 = pnand %p1509_p6, %p1506_p5 }
 0x697   :  { %1514 = shalt.err (!%p1511_p7)
}
 0x698   :  { %1306 = dma.vmem_to_hbm [thread:$0]  %s1304_s8, 16, %s2213_s15, [#allocation5]  }
 0x699   :  { %1515 = dma.done.wait [#allocation5], 16  }
 0x69a   :  { %1516 = vsyncadd [#allocation5], 4294967280 }
 0x69b   :  { %1310 = vsyncpa [#allocation5], 1 }

</bundles_post_ra>
